<compile_context>
chip_gen: v7x
topology: tpu7x:2x2x1
jax: 0.10.0
libtpu: 0.0.40
codegen_flags: <defaults>
</compile_context>

<pallas_src>
import jax
import jax.numpy as jnp
from jax import lax
from jax.experimental import pallas as pl
from jax.experimental.pallas import tpu as pltpu


_LN_EPS = 1e-12


def _layer_norm_f32(x, gamma, beta, eps=_LN_EPS):
    """Row-wise LayerNorm in f32 (matches nn.LayerNorm(dim, eps=1e-12))."""
    mean = jnp.mean(x, axis=-1, keepdims=True)
    c = x - mean
    var = jnp.mean(c * c, axis=-1, keepdims=True)
    return c * lax.rsqrt(var + eps) * gamma + beta


def rev_block_kernel(x_ref, wf_ref, wg_ref, p_ref, out_ref):
    D = wf_ref.shape[0]
    lane_aligned = (D % 128 == 0)        # static (trace-time) switch

    params = p_ref[...]                  # (4, D) f32: [bf, bg, gamma, beta]
    bf, bg = params[0:1, :], params[1:2, :]
    gamma, beta = params[2:3, :], params[3:4, :]

    if lane_aligned:
        # Two lane-aligned half loads; no full-width temporary is held.
        x1 = x_ref[:, :D]
        x2 = x_ref[:, D:]
    else:
        x = x_ref[...]
        x1, x2 = x[:, :D], x[:, D:]

    # y1 = LN(x1 + f(x2));  f(x2) = x2 @ Wf + bf
    # MXU consumes the native operand dtype (bf16 fast path), accumulates f32.
    f_out = jnp.dot(x2, wf_ref[...], preferred_element_type=jnp.float32) + bf
    y1 = _layer_norm_f32(x1.astype(jnp.float32) + f_out, gamma, beta)

    if lane_aligned:
        # Store y1 as soon as it is final (before the second matmul).
        out_ref[:, :D] = y1.astype(out_ref.dtype)

    # y2 = LN(x2 + g(y1));  g(y1) = y1 @ Wg + bg
    g_out = jnp.dot(y1.astype(wg_ref.dtype), wg_ref[...],
                    preferred_element_type=jnp.float32) + bg
    y2 = _layer_norm_f32(x2.astype(jnp.float32) + g_out, gamma, beta)

    if lane_aligned:
        out_ref[:, D:] = y2.astype(out_ref.dtype)
    else:
        # Fallback for non-lane-aligned D (e.g. the tiny demo dims).
        out_ref[...] = jnp.concatenate([y1, y2], axis=-1).astype(out_ref.dtype)

    # TODO(synk): for compute-bound configs (D >= ~1k) split the M tile into
    # two sub-chunks so the MXU of chunk B overlaps the LayerNorm of chunk A.


def _round_up(a, b):
    return ((a + b - 1) // b) * b


def _sublane_tile(dtype):
    # f32 -> 8, bf16 -> 16, int8/fp8 -> 32 (packed dtypes pack along sublanes).
    return max(8, 32 // max(1, jnp.dtype(dtype).itemsize))


_VMEM_BUDGET = 48 * 2**20     # headroom below v7x's 64 MiB physical VMEM
_VMEM_FLOOR = 32 * 2**20      # above v5e's 16 MiB scoped default


def _plan(M, D, D2, act_bytes, w_bytes, tile_m, sublane):
    """Pick the M tile and VMEM limit from a per-generation-safe budget."""
    # Constant-index blocks are single-buffered (pl.Buffered(1)).
    const_bytes = 2 * D * D * w_bytes + 4 * D * 4

    def needed(tm):
        act = 2 * 2 * tm * D2 * act_bytes      # x + out tiles, double-buffered
        interm = 4 * tm * D * 4                # f32 intermediates / spill headroom
        return const_bytes + act + interm

    # Largest tile: the default, but no bigger than the (rounded) problem and
    # no bigger than what keeps ~8 grid steps alive (v7x has 2 TensorCores),
    # without dropping below 128 rows just for the step count.
    tm = min(_round_up(min(tile_m, M), sublane),
             max(128, _round_up(pl.cdiv(M, 8), sublane)))
    tm = max(tm, sublane)

    # Shrink the tile (never below one sublane tile) until the plan fits.
    while tm > sublane and needed(tm) > _VMEM_BUDGET:
        tm = max(sublane, _round_up(tm // 2, sublane))

    vmem_limit = int(min(max(int(1.5 * needed(tm)), _VMEM_FLOOR), _VMEM_BUDGET))
    return tm, vmem_limit


def reversible_residual_block(x, wf, bf, wg, bg, ln_gamma, ln_beta, *,
                              tile_m=512):
    """x: [B, S, 2*D].  wf, wg: [D, D] stored (in, out).  bf, bg, ln_*: [D].

    Feed bf16 activations/weights (bf16 x => bf16 output) for the HBM + MXU
    fast path; accumulation, residual add and LayerNorm stay in f32 inside the
    kernel.  For best MXU utilization pick D as a multiple of 256 on v6e/v7x
    (128 on v5e); small D is bandwidth/overhead bound regardless.
    """
    B, S, D2 = x.shape
    assert D2 % 2 == 0, "feature dim must be even (split into two halves)"
    D = D2 // 2
    M = B * S

    x_flat = x.reshape(M, D2)                       # free reshape, no HBM copy

    sublane = _sublane_tile(x.dtype)
    tm, vmem_limit = _plan(M, D, D2,
                           jnp.dtype(x.dtype).itemsize,
                           jnp.dtype(wf.dtype).itemsize,
                           tile_m, sublane)
    grid = (pl.cdiv(M, tm),)

    # Pack the four per-feature vectors into one (4, D) f32 operand.
    params = jnp.stack([bf, bg, ln_gamma, ln_beta], axis=0).astype(jnp.float32)

    x_spec = pl.BlockSpec((tm, D2), lambda i: (i, 0))
    w_spec = pl.BlockSpec((D, D), lambda i: (0, 0),
                          pipeline_mode=pl.Buffered(1))
    p_spec = pl.BlockSpec((4, D), lambda i: (0, 0),
                          pipeline_mode=pl.Buffered(1))
    out_spec = pl.BlockSpec((tm, D2), lambda i: (i, 0))

    out = pl.pallas_call(
        rev_block_kernel,
        out_shape=jax.ShapeDtypeStruct((M, D2), x.dtype),
        grid_spec=pltpu.PrefetchScalarGridSpec(
            num_scalar_prefetch=0,
            grid=grid,
            in_specs=[x_spec, w_spec, w_spec, p_spec],
            out_specs=out_spec),
        compiler_params=pltpu.CompilerParams(
            dimension_semantics=("parallel",),
            vmem_limit_bytes=vmem_limit),
    )(x_flat, wf, wg, params)

    return out.reshape(B, S, D2)


def _reference_f32(x, wf, bf, wg, bg, ln_gamma, ln_beta):
    x = x.astype(jnp.float32)
    wf = wf.astype(jnp.float32)
    wg = wg.astype(jnp.float32)
    D = x.shape[-1] // 2
    x1, x2 = x[..., :D], x[..., D:]
    y1 = _layer_norm_f32(x1 + (x2 @ wf + bf), ln_gamma, ln_beta)
    y2 = _layer_norm_f32(x2 + (y1 @ wg + bg), ln_gamma, ln_beta)
    return jnp.concatenate([y1, y2], axis=-1)


if __name__ == "__main__":
    # Small shapes consistent with the module: dim_model = 32, so the full
    # (pre-split) feature dim is 2 * 32 = 64.
    B, S, D = 2, 8, 32
    key = jax.random.PRNGKey(0)
    kx, kwf, kbf, kwg, kbg = jax.random.split(key, 5)

    x = jax.random.normal(kx, (B, S, 2 * D), dtype=jnp.float32)

    # Deterministic parameter init (f and g instantiated as dense layers).
    wf = jax.random.normal(kwf, (D, D), dtype=jnp.float32) * 0.1
    bf = jax.random.normal(kbf, (D,), dtype=jnp.float32) * 0.1
    wg = jax.random.normal(kwg, (D, D), dtype=jnp.float32) * 0.1
    bg = jax.random.normal(kbg, (D,), dtype=jnp.float32) * 0.1
    # nn.LayerNorm(dim_model, eps=1e-12) default init: weight=1, bias=0.
    ln_gamma = jnp.ones((D,), dtype=jnp.float32)
    ln_beta = jnp.zeros((D,), dtype=jnp.float32)

    ref = _reference_f32(x, wf, bf, wg, bg, ln_gamma, ln_beta)

    # f32 path.
    out = jax.block_until_ready(
        reversible_residual_block(x, wf, bf, wg, bg, ln_gamma, ln_beta))
    assert out.shape == (B, S, 2 * D)
    assert jnp.allclose(out, ref, atol=1e-5, rtol=1e-5), "f32 mismatch vs reference"

    # bf16 fast path (bf16 I/O + weights, f32 accumulation / LayerNorm inside).
    out_bf16 = jax.block_until_ready(
        reversible_residual_block(x.astype(jnp.bfloat16),
                                  wf.astype(jnp.bfloat16), bf,
                                  wg.astype(jnp.bfloat16), bg,
                                  ln_gamma, ln_beta))
    assert out_bf16.dtype == jnp.bfloat16
    assert jnp.allclose(out_bf16.astype(jnp.float32), ref,
                        atol=7.5e-2, rtol=5e-2), "bf16 mismatch vs f32 reference"

    print("KERNEL_OK")
</pallas_src>

<mosaic_0001>
module attributes {stable_mosaic.version = 11 : i64} {
  func.func @rev_block_kernel(%arg0: i32, %arg1: memref<16x64xf32, #tpu.memory_space<vmem>>, %arg2: memref<32x32xf32, #tpu.memory_space<vmem>>, %arg3: memref<32x32xf32, #tpu.memory_space<vmem>>, %arg4: memref<4x32xf32, #tpu.memory_space<vmem>>, %arg5: memref<16x64xf32, #tpu.memory_space<vmem>>) attributes {dimension_semantics = [#tpu.dimension_semantics<parallel>], iteration_bounds = array<i64: 1>, scalar_prefetch = 0 : i64, scratch_operands = 0 : i64, tpu.core_type = #tpu.core_type<tc>, window_params = [{transform_indices = @transform_0, window_bounds = array<i64: 16, 64>}, {pipeline_mode = #tpu.pipeline_mode<synchronous>, transform_indices = @transform_1, window_bounds = array<i64: 32, 32>}, {pipeline_mode = #tpu.pipeline_mode<synchronous>, transform_indices = @transform_2, window_bounds = array<i64: 32, 32>}, {pipeline_mode = #tpu.pipeline_mode<synchronous>, transform_indices = @transform_3, window_bounds = array<i64: 4, 32>}, {transform_indices = @transform_4, window_bounds = array<i64: 16, 64>}]} {
    %c0 = arith.constant 0 : index
    %c0_0 = arith.constant 0 : index
    %0 = vector.load %arg4[%c0, %c0_0] : memref<4x32xf32, #tpu.memory_space<vmem>>, vector<4x32xf32>
    %1 = vector.extract_strided_slice %0 {offsets = [0, 0], sizes = [1, 32], strides = [1, 1]} : vector<4x32xf32> to vector<1x32xf32>
    %2 = vector.extract_strided_slice %0 {offsets = [1, 0], sizes = [1, 32], strides = [1, 1]} : vector<4x32xf32> to vector<1x32xf32>
    %3 = vector.extract_strided_slice %0 {offsets = [2, 0], sizes = [1, 32], strides = [1, 1]} : vector<4x32xf32> to vector<1x32xf32>
    %4 = vector.extract_strided_slice %0 {offsets = [3, 0], sizes = [1, 32], strides = [1, 1]} : vector<4x32xf32> to vector<1x32xf32>
    %c0_1 = arith.constant 0 : index
    %c0_2 = arith.constant 0 : index
    %5 = vector.load %arg1[%c0_1, %c0_2] : memref<16x64xf32, #tpu.memory_space<vmem>>, vector<16x64xf32>
    %6 = vector.extract_strided_slice %5 {offsets = [0, 0], sizes = [16, 32], strides = [1, 1]} : vector<16x64xf32> to vector<16x32xf32>
    %7 = vector.extract_strided_slice %5 {offsets = [0, 32], sizes = [16, 32], strides = [1, 1]} : vector<16x64xf32> to vector<16x32xf32>
    %c0_3 = arith.constant 0 : index
    %c0_4 = arith.constant 0 : index
    %8 = vector.load %arg2[%c0_3, %c0_4] : memref<32x32xf32, #tpu.memory_space<vmem>>, vector<32x32xf32>
    %cst = arith.constant dense<0.000000e+00> : vector<16x32xf32>
    %9 = tpu.matmul %7, %8, %cst {dimension_numbers = #tpu.dot_dimension_numbers<[1], [0], [0], [1], [0, 0, 1, 1], [], []>} : vector<16x32xf32>, vector<32x32xf32>, vector<16x32xf32> -> vector<16x32xf32>
    %10 = vector.broadcast %1 : vector<1x32xf32> to vector<16x32xf32>
    %11 = arith.addf %9, %10 : vector<16x32xf32>
    %12 = arith.addf %6, %11 : vector<16x32xf32>
    %cst_5 = arith.constant dense<0.000000e+00> : vector<16xf32>
    %13 = vector.multi_reduction <add>, %12, %cst_5 [1] : vector<16x32xf32> to vector<16xf32>
    %14 = vector.shape_cast %13 : vector<16xf32> to vector<16x1xf32>
    %cst_6 = arith.constant 3.200000e+01 : f32
    %15 = vector.broadcast %cst_6 : f32 to vector<16x1xf32>
    %16 = arith.divf %14, %15 : vector<16x1xf32>
    %17 = vector.broadcast %16 : vector<16x1xf32> to vector<16x32xf32>
    %18 = arith.subf %12, %17 : vector<16x32xf32>
    %19 = arith.mulf %18, %18 : vector<16x32xf32>
    %cst_7 = arith.constant dense<0.000000e+00> : vector<16xf32>
    %20 = vector.multi_reduction <add>, %19, %cst_7 [1] : vector<16x32xf32> to vector<16xf32>
    %21 = vector.shape_cast %20 : vector<16xf32> to vector<16x1xf32>
    %cst_8 = arith.constant 3.200000e+01 : f32
    %22 = vector.broadcast %cst_8 : f32 to vector<16x1xf32>
    %23 = arith.divf %21, %22 : vector<16x1xf32>
    %cst_9 = arith.constant 9.99999996E-13 : f32
    %24 = vector.broadcast %cst_9 : f32 to vector<16x1xf32>
    %25 = arith.addf %23, %24 : vector<16x1xf32>
    %26 = math.rsqrt %25 : vector<16x1xf32>
    %27 = vector.broadcast %26 : vector<16x1xf32> to vector<16x32xf32>
    %28 = arith.mulf %18, %27 : vector<16x32xf32>
    %29 = vector.broadcast %3 : vector<1x32xf32> to vector<16x32xf32>
    %30 = arith.mulf %28, %29 : vector<16x32xf32>
    %31 = vector.broadcast %4 : vector<1x32xf32> to vector<16x32xf32>
    %32 = arith.addf %30, %31 : vector<16x32xf32>
    %c0_10 = arith.constant 0 : index
    %c0_11 = arith.constant 0 : index
    %33 = vector.load %arg3[%c0_10, %c0_11] : memref<32x32xf32, #tpu.memory_space<vmem>>, vector<32x32xf32>
    %cst_12 = arith.constant dense<0.000000e+00> : vector<16x32xf32>
    %34 = tpu.matmul %32, %33, %cst_12 {dimension_numbers = #tpu.dot_dimension_numbers<[1], [0], [0], [1], [0, 0, 1, 1], [], []>} : vector<16x32xf32>, vector<32x32xf32>, vector<16x32xf32> -> vector<16x32xf32>
    %35 = vector.broadcast %2 : vector<1x32xf32> to vector<16x32xf32>
    %36 = arith.addf %34, %35 : vector<16x32xf32>
    %37 = arith.addf %7, %36 : vector<16x32xf32>
    %cst_13 = arith.constant dense<0.000000e+00> : vector<16xf32>
    %38 = vector.multi_reduction <add>, %37, %cst_13 [1] : vector<16x32xf32> to vector<16xf32>
    %39 = vector.shape_cast %38 : vector<16xf32> to vector<16x1xf32>
    %cst_14 = arith.constant 3.200000e+01 : f32
    %40 = vector.broadcast %cst_14 : f32 to vector<16x1xf32>
    %41 = arith.divf %39, %40 : vector<16x1xf32>
    %42 = vector.broadcast %41 : vector<16x1xf32> to vector<16x32xf32>
    %43 = arith.subf %37, %42 : vector<16x32xf32>
    %44 = arith.mulf %43, %43 : vector<16x32xf32>
    %cst_15 = arith.constant dense<0.000000e+00> : vector<16xf32>
    %45 = vector.multi_reduction <add>, %44, %cst_15 [1] : vector<16x32xf32> to vector<16xf32>
    %46 = vector.shape_cast %45 : vector<16xf32> to vector<16x1xf32>
    %cst_16 = arith.constant 3.200000e+01 : f32
    %47 = vector.broadcast %cst_16 : f32 to vector<16x1xf32>
    %48 = arith.divf %46, %47 : vector<16x1xf32>
    %cst_17 = arith.constant 9.99999996E-13 : f32
    %49 = vector.broadcast %cst_17 : f32 to vector<16x1xf32>
    %50 = arith.addf %48, %49 : vector<16x1xf32>
    %51 = math.rsqrt %50 : vector<16x1xf32>
    %52 = vector.broadcast %51 : vector<16x1xf32> to vector<16x32xf32>
    %53 = arith.mulf %43, %52 : vector<16x32xf32>
    %54 = vector.broadcast %3 : vector<1x32xf32> to vector<16x32xf32>
    %55 = arith.mulf %53, %54 : vector<16x32xf32>
    %56 = vector.broadcast %4 : vector<1x32xf32> to vector<16x32xf32>
    %57 = arith.addf %55, %56 : vector<16x32xf32>
    %58 = tpu.concatenate %32, %57 in 1 : vector<16x32xf32>, vector<16x32xf32> -> vector<16x64xf32>
    %c0_18 = arith.constant 0 : index
    %c0_19 = arith.constant 0 : index
    %59 = vector.load %arg5[%c0_18, %c0_19] : memref<16x64xf32, #tpu.memory_space<vmem>>, vector<16x64xf32>
    tpu.vector_store %arg5[%c0_18, %c0_19], %58 {strides = array<i32>} : memref<16x64xf32, #tpu.memory_space<vmem>>, vector<16x64xf32>,
    return
  }
  func.func @transform_0(%arg0: i32) -> (i32, i32) {
    %c0_i32 = arith.constant 0 : i32
    %c0_i32_0 = arith.constant 0 : i32
    return %arg0, %c0_i32 : i32, i32
  }
  func.func @transform_1(%arg0: i32) -> (i32, i32) {
    %c0_i32 = arith.constant 0 : i32
    %c0_i32_0 = arith.constant 0 : i32
    %c0_i32_1 = arith.constant 0 : i32
    return %c0_i32, %c0_i32_0 : i32, i32
  }
  func.func @transform_2(%arg0: i32) -> (i32, i32) {
    %c0_i32 = arith.constant 0 : i32
    %c0_i32_0 = arith.constant 0 : i32
    %c0_i32_1 = arith.constant 0 : i32
    return %c0_i32, %c0_i32_0 : i32, i32
  }
  func.func @transform_3(%arg0: i32) -> (i32, i32) {
    %c0_i32 = arith.constant 0 : i32
    %c0_i32_0 = arith.constant 0 : i32
    %c0_i32_1 = arith.constant 0 : i32
    return %c0_i32, %c0_i32_0 : i32, i32
  }
  func.func @transform_4(%arg0: i32) -> (i32, i32) {
    %c0_i32 = arith.constant 0 : i32
    %c0_i32_0 = arith.constant 0 : i32
    return %arg0, %c0_i32 : i32, i32
  }
}

</mosaic_0001>

<bundles_post_ra>
// kernel: tpu_custom_call.1
= control target key start
LH: loop header
LB: loop body
LE: loop exit
PB: predicated region body
PF: predicated region fallthrough
CT: control target
= control target key end

     0   :  { %9 = vsyncpa [#allocation3], 0  ;;  %s682_s0 = inlined_call_operand.hbm [shape: f32[16,64], index: 0, kind: input, shape index: {}]   ;;  %s683_s1 = inlined_call_operand.hbm [shape: f32[32,32], index: 1, kind: input, shape index: {}]   ;;  %s684_s2 = inlined_call_operand.hbm [shape: f32[32,32], index: 2, kind: input, shape index: {}]   ;;  %s685_s3 = inlined_call_operand.vmem [shape: f32[4,32], index: 3, kind: input, shape index: {}]   ;;  %s686_s4 = inlined_call_operand.hbm [shape: f32[16,64], index: 4, kind: output, shape index: {}]  }
   0x1   :  { %10 = vsyncpa [#allocation6], 0 }
   0x2   :  { %11 = vsyncpa [#allocation4], 0  ;;  %s537_s15 = smov [#allocation5]   ;;  %s538_s17 = smov [#allocation2]  }
   0x3   :  { %s29_s16 = sshll.u32 %s537_s15, 4  ;;  %s17_s18 = sshll.u32 %s538_s17, 4  ;;  %s30_s16 = int_to_ptr.vmem [resolvable:$true] %s29_s16  ;;  %s570_s18 = int_to_ptr.vmem [resolvable:$true] %s17_s18 }
   0x4   :  { %s443_s21 = scalar_lea.hbm %s683_s1, 512 }
   0x5   :  { %p444_p0 = scmp.ne.s32.totalorder %s683_s1, %s443_s21  ;;  %p447_p1 = scmp.lt.u32.totalorder %s443_s21, %s683_s1 }
   0x7   :  { %p449_p2 = pnand %p447_p1, %p444_p0 }
   0x9   :  { %452 = shalt.err (!%p449_p2)
}
   0xa   :  { %s453_s26 = scalar_lea.vmem %s30_s16, 512  ;;  %p458_p4 = scmp.lt.s32.totalorder %s30_s16, %s30_s16 }
   0xb   :  { %p454_p3 = scmp.ne.s32.totalorder %s30_s16, %s453_s26  ;;  %p459_p5 = scmp.lt.s32.totalorder %s453_s26, %s453_s26 }
   0xd   :  { %p460_p6 = por %p459_p5, %p458_p4 }
   0xf   :  { %p461_p7 = pnand %p460_p6, %p454_p3 }
  0x11   :  { %464 = shalt.err (!%p461_p7)
}
  0x12   :  { %s539_s27 = smov 128   ;;  %s540_s28 = smov 8  }
  0x13   :  { %35 = dma.hbm_to_vmem [thread:$0]  %s683_s1, 512, %s30_s16, [#allocation6], %s539_s27, %s539_s27, %s540_s28  }
  0x14   :  { %s465_s7 = scalar_lea.hbm %s682_s0, 256 }
  0x15   :  { %p466_p8 = scmp.ne.s32.totalorder %s682_s0, %s465_s7  ;;  %p469_p9 = scmp.lt.u32.totalorder %s465_s7, %s682_s0 }
  0x17   :  { %p471_p10 = pnand %p469_p9, %p466_p8 }
  0x19   :  { %474 = shalt.err (!%p471_p10)
}
  0x1a   :  { %s475_s12 = scalar_lea.vmem %s570_s18, 256  ;;  %p480_p12 = scmp.lt.s32.totalorder %s570_s18, %s570_s18 }
  0x1b   :  { %p476_p11 = scmp.ne.s32.totalorder %s570_s18, %s475_s12  ;;  %p481_p13 = scmp.lt.s32.totalorder %s475_s12, %s475_s12 }
  0x1d   :  { %p482_p0 = por %p481_p13, %p480_p12 }
  0x1f   :  { %p483_p1 = pnand %p482_p0, %p476_p11 }
  0x21   :  { %486 = shalt.err (!%p483_p1)
}
  0x22   :  { %23 = dma.hbm_to_vmem [thread:$0]  %s682_s0, 256, %s570_s18, [#allocation3], %s539_s27, %s539_s27, %s540_s28  }
  0x23   :  { %s541_s14 = smov [#allocation7]   ;;  %s487_s19 = scalar_lea.hbm %s684_s2, 512 }
  0x24   :  { %s41_s15 = sshll.u32 %s541_s14, 4  ;;  %p488_p2 = scmp.ne.s32.totalorder %s684_s2, %s487_s19  ;;  %s42_s15 = int_to_ptr.vmem [resolvable:$true] %s41_s15 }
  0x25   :  { %p491_p3 = scmp.lt.u32.totalorder %s487_s19, %s684_s2 }
  0x27   :  { %p493_p4 = pnand %p491_p3, %p488_p2 }
  0x29   :  { %496 = shalt.err (!%p493_p4)
}
  0x2a   :  { %s497_s24 = scalar_lea.vmem %s42_s15, 512  ;;  %p502_p6 = scmp.lt.s32.totalorder %s42_s15, %s42_s15 }
  0x2b   :  { %p498_p5 = scmp.ne.s32.totalorder %s42_s15, %s497_s24  ;;  %p503_p7 = scmp.lt.s32.totalorder %s497_s24, %s497_s24 }
  0x2d   :  { %p504_p8 = por %p503_p7, %p502_p6 }
  0x2f   :  { %p505_p9 = pnand %p504_p8, %p498_p5 }
  0x31   :  { %508 = shalt.err (!%p505_p9)
}
  0x32   :  { %47 = dma.hbm_to_vmem [thread:$0]  %s684_s2, 512, %s42_s15, [#allocation6], %s539_s27, %s539_s27, %s540_s28  }
  0x33   :  { %531 = dma.done.wait [#allocation3], 256  }
  0x34   :  { %532 = vsyncadd [#allocation3], 4294967040 }
  0x35   :  { %533 = dma.done.wait [#allocation6], 1024  }
  0x36   :  { %534 = vsyncadd [#allocation6], 4294966272  ;;  %v622_v0 = vld [vmem:[#allocation2] sm:$0xff]  ;;  %v62_v1 = vld [vmem:[#allocation5] sm:$0xff]  ;;  %s542_s25 = smov 96   ;;  %vm76_vm0 = vcmask 261120   ;;  %v66_v10 = vlaneseq }
  0x37   :  { %72 = vrot.lane.b32.xlu0 %v622_v0, %s542_s25  ;;  %v63_v2 = vld [vmem:[#allocation5 + $0x8] sm:$0xff]  ;;  %v64_v3 = vld [vmem:[#allocation5 + $0x10] sm:$0xff]  ;;  %v65_v4 = vld [vmem:[#allocation5 + $0x18] sm:$0xff]  ;;  %vm352_vm1 = vcmask 523264   ;;  %s544_s29 = smov [#allocation8]  }
  0x38   :  { %v626_v5 = vld [vmem:[#allocation2 + $0x8] sm:$0xff]  ;;  %v411_v6 = vpack.c.bf16 %v63_v2, %v62_v1  ;;  %v415_v7 = vpack.c.bf16 %v65_v4, %v64_v3  ;;  %v67_v11 = vshrl.u32 %v66_v10, 7  ;;  %v59_v13 = vld [vmem:[%s685_s3] sm:$0xf]  ;;  %v197_v33 = vld [vmem:[#allocation7] sm:$0xff]  ;;  %s543_s3 = smov 32  }
  0x39   :  { %v198_v34 = vld [vmem:[#allocation7 + $0x8] sm:$0xff]  ;;  %v199_v35 = vld [vmem:[#allocation7 + $0x10] sm:$0xff]  ;;  %v200_v37 = vld [vmem:[#allocation7 + $0x18] sm:$0xff]  ;;  %s360_s30 = sshll.u32 %s544_s29, 4  ;;  %s361_s30 = int_to_ptr.vmem [resolvable:$true] %s360_s30 }
  0x3a   :  { %412 = vmatprep.subr.bf16.mxu0 %v411_v6  ;;  %v68_v12 = vsub.s32 0, %v67_v11  ;;  %v419_v36 = vpack.c.bf16 %v198_v34, %v197_v33  ;;  %v423_v38 = vpack.c.bf16 %v200_v37, %v199_v35  ;;  %v187_v45 = vsub.s32 2, %v67_v11  ;;  %s509_s5 = scalar_lea.vmem %s361_s30, 256  ;;  %p514_p11 = scmp.lt.s32.totalorder %s361_s30, %s361_s30 }
  0x3b   :  { %74 = vrot.lane.b32.xlu0 %v626_v5, %s542_s25  ;;  %414 = vmatpush3.bf16.msra.mxu0 %v411_v6  ;;  %v193_v46 = vsub.s32 3, %v67_v11  ;;  %v203_v57 = vsub.s32 1, %v67_v11  ;;  %p510_p10 = scmp.ne.s32.totalorder %s361_s30, %s509_s5  ;;  %p515_p12 = scmp.lt.s32.totalorder %s509_s5, %s509_s5 }
  0x3c   :  { %416 = vmatprep.subr.bf16.mxu0 %v415_v7  ;;  %v69_v14 = vrot.slane %v59_v13, %v68_v12  ;;  %420 = vmatprep.subr.bf16.mxu1 %v419_v36  ;;  %v188_v47 = vrot.slane %v59_v13, %v187_v45 }
  0x3d   :  { %422 = vmatpush3.bf16.msra.mxu1 %v419_v36  ;;  %v194_v50 = vrot.slane %v59_v13, %v193_v46  ;;  %v204_v58 = vrot.slane %v59_v13, %v203_v57  ;;  %p516_p13 = por %p515_p12, %p514_p11 }
  0x3e   :  { %424 = vmatprep.subr.bf16.mxu1 %v423_v38 }
  0x3f   :  { %418 = vmatpush3.bf16.msra.mxu0 %v415_v7  ;;  %p517_p0 = pnand %p516_p13, %p510_p10 }
  0x41   :  { %426 = vmatpush3.bf16.msra.mxu1 %v423_v38 }
  0xa9   :  { %v73_v8 = vpop.permute.xlu0 %72 }
  0xaa   :  { %397 = vmatprep.mubr.msk.f32.mxu0 %vm76_vm0, %v73_v8 }
  0xad   :  { %v75_v9 = vpop.permute.xlu0 %74 }
  0xae   :  { %398 = vmatmul.mubr.msk.f32.vlgmr.msra.gmra.mrb[0].mxu0 %vm76_vm0, %v75_v9 }
 0x181   :  { %v399_v15 = vpop.f32.mrb[0].mxu0 }
 0x182   :  { %v147_v16 = vpop.f32.mrb[1].mxu0  ;;  %v153_v17 = vadd.f32 %v399_v15, %v69_v14 }
 0x183   :  { %v148_v18 = vadd.f32 %v147_v16, %v69_v14 }
 0x184   :  { %v157_v21 = vadd.f32 %v153_v17, %v626_v5 }
 0x185   :  { %v156_v19 = vadd.f32 %v148_v18, %v622_v0 }
 0x186   :  { %v161_v22 = vsel %vm76_vm0, %v157_v21, 0.0 }
 0x187   :  { %v158_v20 = vsel %vm76_vm0, %v156_v19, 0.0 }
 0x188   :  { %159 = vadd.xlane.f32.xlu1 %v158_v20 }
 0x18c   :  { %162 = vadd.xlane.f32.xlu1 %v161_v22 }
 0x215   :  { %v160_v23 = vpop.xlane.xlu1 %159 }
 0x216   :  { %v165_v24 = vmul.f32 0.03125, %v160_v23 }
 0x218   :  { %v167_v25 = vsub.f32 %v156_v19, %v165_v24 }
 0x219   :  { %v163_v26 = vpop.xlane.xlu1 %162 }
 0x21a   :  { %v166_v27 = vmul.f32 0.03125, %v163_v26  ;;  %v169_v28 = vmul.f32 %v167_v25, %v167_v25 }
 0x21c   :  { %v168_v29 = vsub.f32 %v157_v21, %v166_v27  ;;  %v171_v30 = vsel %vm76_vm0, %v169_v28, 0.0 }
 0x21d   :  { %172 = vadd.xlane.f32.xlu0 %v171_v30 }
 0x21e   :  { %v170_v31 = vmul.f32 %v168_v29, %v168_v29 }
 0x220   :  { %v174_v32 = vsel %vm76_vm0, %v170_v31, 0.0 }
 0x221   :  { %175 = vadd.xlane.f32.xlu1 %v174_v32 }
 0x2aa   :  { %v173_v39 = vpop.xlane.xlu0 %172 }
 0x2ab   :  { %v177_v40 = vmul.f32 0.03125, %v173_v39 }
 0x2ad   :  { %v179_v41 = vadd.f32 1e-12, %v177_v40 }
 0x2ae   :  { %v176_v42 = vpop.xlane.xlu1 %175 }
 0x2af   :  { %435 = vrsqrt.f32 %v179_v41  ;;  %v178_v43 = vmul.f32 0.03125, %v176_v42 }
 0x2b1   :  { %v180_v44 = vadd.f32 1e-12, %v178_v43 }
 0x2b3   :  { %437 = vrsqrt.f32 %v180_v44 }
 0x2b9   :  { %v436_v48 = vpop.eup %435 }
 0x2ba   :  { %v183_v49 = vmul.f32 %v436_v48, %v167_v25 }
 0x2bc   :  { %v189_v51 = vmul.f32 %v188_v47, %v183_v49 }
 0x2bd   :  { %v438_v52 = vpop.eup %437 }
 0x2be   :  { %v641_v53 = vadd.f32 %v194_v50, %v189_v51  ;;  %v184_v54 = vmul.f32 %v438_v52, %v168_v29 }
 0x2c0   :  { %408 = vmatprep.mubr.msk.f32.mxu1 %vm76_vm0, %v641_v53  ;;  %v190_v55 = vmul.f32 %v188_v47, %v184_v54 }
 0x2c2   :  { %v645_v56 = vadd.f32 %v194_v50, %v190_v55 }
 0x2c4   :  { %409 = vmatmul.mubr.msk.f32.vlgmr.msra.gmra.mrb[0].mxu1 %vm76_vm0, %v645_v56 }
 0x397   :  { %v410_v59 = vpop.f32.mrb[0].mxu1 }
 0x398   :  { %v277_v60 = vpop.f32.mrb[1].mxu1  ;;  %v283_v62 = vadd.f32 %v410_v59, %v204_v58 }
 0x399   :  { %v278_v61 = vadd.f32 %v277_v60, %v204_v58 }
 0x39b   :  { %288 = vrot.lane.b32.xlu1 %v278_v61, %s543_s3 }
 0x39f   :  { %290 = vrot.lane.b32.xlu1 %v283_v62, %s543_s3 }
 0x40d   :  { %v289_v63 = vpop.permute.xlu1 %288 }
 0x40e   :  { %v294_v1 = vadd.f32 %v289_v63, %v622_v0 }
 0x410   :  { %298 = vrot.lane.b32.xlu1 %v294_v1, %s542_s25 }
 0x411   :  { %v291_v2 = vpop.permute.xlu1 %290 }
 0x412   :  { %v295_v3 = vadd.f32 %v291_v2, %v626_v5 }
 0x414   :  { %300 = vrot.lane.b32.xlu1 %v295_v3, %s542_s25 }
 0x482   :  { %v299_v4 = vpop.permute.xlu1 %298 }
 0x483   :  { %v304_v6 = vsel %vm76_vm0, %v299_v4, 0.0 }
 0x484   :  { %305 = vadd.xlane.f32.xlu0 %v304_v6 }
 0x486   :  { %v301_v7 = vpop.permute.xlu1 %300 }
 0x487   :  { %v307_v8 = vsel %vm76_vm0, %v301_v7, 0.0 }
 0x488   :  { %308 = vadd.xlane.f32.xlu1 %v307_v8 }
 0x511   :  { %v306_v9 = vpop.xlane.xlu0 %305 }
 0x512   :  { %v310_v10 = vmul.f32 0.03125, %v306_v9 }
 0x514   :  { %v312_v11 = vsub.f32 %v294_v1, %v310_v10 }
 0x515   :  { %v309_v12 = vpop.xlane.xlu1 %308 }
 0x516   :  { %v311_v0 = vmul.f32 0.03125, %v309_v12  ;;  %v314_v13 = vmul.f32 %v312_v11, %v312_v11 }
 0x518   :  { %v313_v14 = vsub.f32 %v295_v3, %v311_v0  ;;  %318 = vrot.lane.b32.xlu0 %v314_v13, %s542_s25 }
 0x51a   :  { %v315_v5 = vmul.f32 %v313_v14, %v313_v14 }
 0x51c   :  { %320 = vrot.lane.b32.xlu0 %v315_v5, %s542_s25 }
 0x58a   :  { %v319_v15 = vpop.permute.xlu0 %318 }
 0x58b   :  { %v324_v16 = vsel %vm76_vm0, %v319_v15, 0.0 }
 0x58c   :  { %325 = vadd.xlane.f32.xlu0 %v324_v16 }
 0x58e   :  { %v321_v17 = vpop.permute.xlu0 %320 }
 0x58f   :  { %v327_v18 = vsel %vm76_vm0, %v321_v17, 0.0 }
 0x590   :  { %328 = vadd.xlane.f32.xlu1 %v327_v18 }
 0x5a1   :  { %339 = vrot.lane.b32.xlu1 %v188_v47, %s543_s3 }
 0x5a5   :  { %345 = vrot.lane.b32.xlu1 %v194_v50, %s543_s3 }
 0x619   :  { %v326_v19 = vpop.xlane.xlu0 %325 }
 0x61a   :  { %v330_v20 = vmul.f32 0.03125, %v326_v19 }
 0x61c   :  { %v332_v21 = vadd.f32 1e-12, %v330_v20 }
 0x61d   :  { %v329_v22 = vpop.xlane.xlu1 %328 }
 0x61e   :  { %439 = vrsqrt.f32 %v332_v21  ;;  %v331_v23 = vmul.f32 0.03125, %v329_v22 }
 0x620   :  { %v333_v24 = vadd.f32 1e-12, %v331_v23 }
 0x621   :  { %v340_v25 = vpop.permute.xlu1 %339 }
 0x622   :  { %441 = vrsqrt.f32 %v333_v24 }
 0x625   :  { %v346_v28 = vpop.permute.xlu1 %345 }
 0x628   :  { %v440_v26 = vpop.eup %439 }
 0x629   :  { %v336_v27 = vmul.f32 %v440_v26, %v312_v11 }
 0x62b   :  { %v342_v29 = vmul.f32 %v340_v25, %v336_v27 }
 0x62c   :  { %v442_v30 = vpop.eup %441 }
 0x62d   :  { %v337_v31 = vmul.f32 %v442_v30, %v313_v14  ;;  %v348_v32 = vadd.f32 %v346_v28, %v342_v29 }
 0x62f   :  { %v343_v33 = vmul.f32 %v340_v25, %v337_v31  ;;  %v350_v34 = vsel %vm76_vm0, %v641_v53, %v348_v32 }
 0x630   :  { %353 = vst.msk [vmem:[#allocation8] sm:$0xff] %vm352_vm1, %v350_v34 }
 0x631   :  { %v349_v35 = vadd.f32 %v346_v28, %v343_v33 }
 0x633   :  { %v351_v36 = vsel %vm76_vm0, %v645_v56, %v349_v35 }
 0x634   :  { %354 = vst.msk [vmem:[#allocation8 + $0x8] sm:$0xff] %vm352_vm1, %v351_v36 }
 0x635   :  { %520 = shalt.err (!%p517_p0)
}
 0x636   :  { %s521_s8 = scalar_lea.hbm %s686_s4, 256 }
 0x637   :  { %p522_p1 = scmp.ne.s32.totalorder %s686_s4, %s521_s8  ;;  %p525_p2 = scmp.lt.u32.totalorder %s521_s8, %s686_s4 }
 0x639   :  { %p527_p3 = pnand %p525_p2, %p522_p1 }
 0x63b   :  { %530 = shalt.err (!%p527_p3)
}
 0x63c   :  { %366 = dma.vmem_to_hbm [thread:$0]  %s361_s30, 256, %s686_s4, [#allocation4], %s539_s27, %s539_s27, %s540_s28  }
 0x63d   :  { %535 = dma.done.wait [#allocation4], 256  }
 0x63e   :  { %536 = vsyncadd [#allocation4], 4294967040 }
 0x63f   :  { %370 = vsyncpa [#allocation3], 1 }
 0x640   :  { %371 = vsyncpa [#allocation6], 1 }
 0x641   :  { %372 = vsyncpa [#allocation4], 1 }

</bundles_post_ra>
